<compile_context>
chip_gen: v6e
topology: v6e:2x2x1
jax: 0.10.0
libtpu: 0.0.40
codegen_flags: <defaults>
</compile_context>

<pallas_src>
import functools

import jax
import jax.numpy as jnp
from jax.experimental import pallas as pl
from jax.experimental.pallas import tpu as pltpu

_MIB = 1024 * 1024


# -----------------------------------------------------------------------------
# Fused single-pass kernel: pool + gate + scale, one sample per grid step.
# -----------------------------------------------------------------------------
def _fused_kernel(x_ref, w1t_ref, w2_ref, o_ref):
    # x_ref  : (1, C, HW)      one sample; C on sublanes, HW on lanes
    # w1t_ref: (C, C//2) f32   Conv_Squeeze weight^T, pre-scaled by 1/HW
    # w2_ref : (C, C//2) f32   Conv_Excitation weight
    # o_ref  : (1, C, HW)
    x = x_ref[...]
    # Global-sum pool over HW in f32; keepdims keeps C on sublanes (no relayout).
    s = jnp.sum(x.astype(jnp.float32), axis=-1, keepdims=True)[0]   # (C, 1)
    # Tiny gate "matmuls" as broadcast-mul + reduce (VPU/XLU; MXU pointless here).
    z1 = jnp.sum(s * w1t_ref[...], axis=0, keepdims=True)           # (1, C//2)
    z2 = jnp.sum(z1 * w2_ref[...], axis=-1, keepdims=True)          # (C, 1)
    gate = 1.0 / (1.0 + jnp.exp(-z2))                               # sigmoid
    # Broadcast-multiply along lanes.  Gate cast to x.dtype (exact for f32).
    o_ref[...] = x * gate[None].astype(x.dtype)                     # (1, C, HW)


# -----------------------------------------------------------------------------
# Two-pass fallback kernels.
# -----------------------------------------------------------------------------
def _pool_kernel(x_ref, sum_ref, *, hw, hw_tile, ragged):
    # x_ref  : (1, C, hw_tile)  spatial tile of one sample
    # sum_ref: (1, C, 1) f32    output block index constant across t
    #                           => VMEM-resident accumulator (P3), no scratch.
    t = pl.program_id(1)

    @pl.when(t == 0)
    def _():
        sum_ref[...] = jnp.zeros_like(sum_ref)

    x = x_ref[...].astype(jnp.float32)
    if ragged:
        # Zero out-of-range lanes of the clipped final tile (their VMEM
        # contents are undefined).  For full tiles the mask is all-true.
        valid = hw - t * hw_tile
        lane = jax.lax.broadcasted_iota(jnp.int32, x.shape, 2)
        x = jnp.where(lane < valid, x, 0.0)
    sum_ref[...] += jnp.sum(x, axis=-1, keepdims=True)               # (1, C, 1)


def _scale_kernel(x_ref, g_ref, o_ref):
    # x_ref: (1, C, hw_tile); g_ref: (1, C, 1) in x.dtype; o_ref like x_ref.
    # Pure vld/vmul/vst stream; gate broadcasts along the lane axis.  The
    # ragged final block's out-of-range lanes are dropped by the output DMA.
    # NOTE: g's index_map is constant in t, so its block stays VMEM-resident.
    o_ref[...] = x_ref[...] * g_ref[...]


def _choose_spatial_tile(C, HW, itemsize, target_bytes):
    """Lane-dense (multiple-of-128) spatial tile of about target_bytes."""
    max_tile = max(128, (target_bytes // max(1, C * itemsize)) // 128 * 128)
    return min(max_tile, pl.cdiv(HW, 128) * 128)


def cse_forward(U, w_squeeze, w_excite, *,
                fused_slab_limit_bytes=4 * _MIB,
                pool_tile_bytes=8 * _MIB,
                scale_tile_bytes=6 * _MIB):
    """cSE forward.  U: (N, C, H, W); w_squeeze: (C//2, C); w_excite: (C, C//2)."""
    N, C, H, W = U.shape
    HW = H * W
    itemsize = jnp.dtype(U.dtype).itemsize
    slab_bytes = C * HW * itemsize
    w_bytes = (C // 2) * C * 4

    x = U.reshape(N, C, HW)
    # Fold the 1/HW mean scale into the (linear) squeeze weight.
    w1 = w_squeeze.astype(jnp.float32) * (1.0 / HW)                  # (C//2, C)

    # ------------------ Fused single-pass path ------------------------------
    if slab_bytes <= fused_slab_limit_bytes:
        w1t = w1.T                                                   # (C, C//2)
        w2 = w_excite.astype(jnp.float32)                            # (C, C//2)
        # Pipeline footprint: input + output double-buffered, plus an f32 temp
        # for the pooled cast when U is sub-32-bit, plus weights + margin.
        footprint = (4 * slab_bytes
                     + (C * HW * 4 if itemsize < 4 else 0)
                     + 2 * w_bytes + 4 * _MIB)
        out = pl.pallas_call(
            _fused_kernel,
            out_shape=jax.ShapeDtypeStruct((N, C, HW), U.dtype),
            grid_spec=pltpu.PrefetchScalarGridSpec(
                num_scalar_prefetch=0,
                grid=(N,),
                in_specs=[
                    pl.BlockSpec((1, C, HW), lambda n: (n, 0, 0)),
                    pl.BlockSpec((C, C // 2), lambda n: (0, 0)),
                    pl.BlockSpec((C, C // 2), lambda n: (0, 0)),
                ],
                out_specs=pl.BlockSpec((1, C, HW), lambda n: (n, 0, 0)),
            ),
            compiler_params=pltpu.CompilerParams(
                dimension_semantics=("parallel",),
                vmem_limit_bytes=int(max(32 * _MIB, footprint))),
            cost_estimate=pl.CostEstimate(
                flops=3 * N * C * HW + 4 * N * C * (C // 2),
                transcendentals=N * C,
                bytes_accessed=2 * N * slab_bytes + 2 * w_bytes),
        )(x, w1t, w2)
        return out.reshape(N, C, H, W)

    # ------------------ Two-pass fallback ------------------------------------
    # Pass 1: tiled global-sum pool over HW (ragged final tile masked in-kernel;
    # no padded copy of U).
    hw_tile1 = _choose_spatial_tile(C, HW, itemsize, pool_tile_bytes)
    n_tiles1 = pl.cdiv(HW, hw_tile1)
    ragged1 = (HW % hw_tile1) != 0
    tile1_bytes = C * hw_tile1 * itemsize
    vmem1 = int(max(32 * _MIB, 2 * tile1_bytes + C * hw_tile1 * 4 + 4 * _MIB))
    # TODO(synk): on v7x with very small N, add a size-2 "parallel" grid axis
    # splitting the t reduction across both TensorCores (partial sums combined
    # in the prologue) so the pooling pass does not serialize on one core.
    sums = pl.pallas_call(
        functools.partial(_pool_kernel, hw=HW, hw_tile=hw_tile1, ragged=ragged1),
        out_shape=jax.ShapeDtypeStruct((N, C, 1), jnp.float32),
        grid_spec=pltpu.PrefetchScalarGridSpec(
            num_scalar_prefetch=0,
            grid=(N, n_tiles1),
            in_specs=[pl.BlockSpec((1, C, hw_tile1), lambda n, t: (n, 0, t))],
            out_specs=pl.BlockSpec((1, C, 1), lambda n, t: (n, 0, 0)),
        ),
        compiler_params=pltpu.CompilerParams(
            dimension_semantics=("parallel", "arbitrary"),
            vmem_limit_bytes=vmem1),
        cost_estimate=pl.CostEstimate(
            flops=N * C * HW, transcendentals=0,
            bytes_accessed=N * slab_bytes + N * C * 4),
    )(x)

    # Prologue (XLA): tiny batched gate matmuls + sigmoid, O(N*C^2) flops.
    # 1/HW is already folded into w1; gate pre-cast to U.dtype so Pass 2 is a
    # bare vld/vmul/vst stream (bf16 note: multiply happens in bf16 there;
    # multiplying in f32 would also be free since Pass 2 is memory-bound).
    z = sums.reshape(N, C) @ w1.T                                    # (N, C//2)
    z = z @ w_excite.astype(jnp.float32).T                           # (N, C)
    gate = jax.nn.sigmoid(z).astype(U.dtype).reshape(N, C, 1)

    # Pass 2: lane-dense streamed broadcast-multiply.  No pad, no output slice:
    # the ragged final block is clipped by the output DMA.
    hw_tile2 = _choose_spatial_tile(C, HW, itemsize, scale_tile_bytes)
    n_tiles2 = pl.cdiv(HW, hw_tile2)
    tile2_bytes = C * hw_tile2 * itemsize
    vmem2 = int(max(32 * _MIB, 4 * tile2_bytes + 4 * _MIB))
    # TODO(synk): if the caller donates U, add input_output_aliases={0: 0} here
    # to reuse U's HBM buffer for the output.
    out = pl.pallas_call(
        _scale_kernel,
        out_shape=jax.ShapeDtypeStruct((N, C, HW), U.dtype),
        grid_spec=pltpu.PrefetchScalarGridSpec(
            num_scalar_prefetch=0,
            grid=(N, n_tiles2),
            in_specs=[
                pl.BlockSpec((1, C, hw_tile2), lambda n, t: (n, 0, t)),
                pl.BlockSpec((1, C, 1), lambda n, t: (n, 0, 0)),
            ],
            out_specs=pl.BlockSpec((1, C, hw_tile2), lambda n, t: (n, 0, t)),
        ),
        compiler_params=pltpu.CompilerParams(
            dimension_semantics=("parallel", "parallel"),
            vmem_limit_bytes=vmem2),
        cost_estimate=pl.CostEstimate(
            flops=N * C * HW, transcendentals=0,
            bytes_accessed=2 * N * slab_bytes + N * C * itemsize),
    )(x, gate)

    return out.reshape(N, C, H, W)


def cse_reference(U, w_squeeze, w_excite):
    """Pure-JAX reference for correctness checking."""
    z = jnp.mean(U, axis=(2, 3))                       # (N, C)
    z = z @ w_squeeze.T                                # (N, C//2)
    z = z @ w_excite.T                                 # (N, C)
    s = jax.nn.sigmoid(z)[:, :, None, None]            # (N, C, 1, 1)
    return U * s


if __name__ == "__main__":
    key = jax.random.PRNGKey(0)
    k_x, k_w1, k_w2, k_x2 = jax.random.split(key, 4)

    # --- Test 1: fused single-pass path (per-sample slab fits VMEM) ---------
    N, C, H, W = 2, 4, 16, 16
    U = jax.random.normal(k_x, (N, C, H, W), dtype=jnp.float32)
    # Conv2d(C, C//2, 1, bias=False) weight -> (C//2, C) after squeezing 1x1
    w_squeeze = jax.random.normal(k_w1, (C // 2, C), dtype=jnp.float32) * 0.5
    # Conv2d(C//2, C, 1, bias=False) weight -> (C, C//2)
    w_excite = jax.random.normal(k_w2, (C, C // 2), dtype=jnp.float32) * 0.5

    out = cse_forward(U, w_squeeze, w_excite)
    jax.block_until_ready(out)
    ref = cse_reference(U, w_squeeze, w_excite)
    assert out.shape == (N, C, H, W)
    assert jnp.allclose(out, ref, atol=1e-5, rtol=1e-5)

    # --- Test 2: two-pass fallback, ragged HW (not a multiple of 128) -------
    N2, C2, H2, W2 = 2, 8, 13, 13                      # HW = 169 -> masked tail
    U2 = jax.random.normal(k_x2, (N2, C2, H2, W2), dtype=jnp.float32)
    w_sq2 = jax.random.normal(k_w1, (C2 // 2, C2), dtype=jnp.float32) * 0.5
    w_ex2 = jax.random.normal(k_w2, (C2, C2 // 2), dtype=jnp.float32) * 0.5
    out2 = cse_forward(U2, w_sq2, w_ex2,
                       fused_slab_limit_bytes=0,       # force two-pass path
                       pool_tile_bytes=2048,           # force multi-tile + ragged
                       scale_tile_bytes=2048)
    jax.block_until_ready(out2)
    ref2 = cse_reference(U2, w_sq2, w_ex2)
    assert out2.shape == (N2, C2, H2, W2)
    assert jnp.allclose(out2, ref2, atol=1e-5, rtol=1e-5)

    print("KERNEL_OK")
</pallas_src>

<mosaic_0001>
module attributes {stable_mosaic.version = 11 : i64} {
  func.func @_fused_kernel(%arg0: i32, %arg1: memref<1x4x256xf32, #tpu.memory_space<vmem>>, %arg2: memref<4x2xf32, #tpu.memory_space<vmem>>, %arg3: memref<4x2xf32, #tpu.memory_space<vmem>>, %arg4: memref<1x4x256xf32, #tpu.memory_space<vmem>>) attributes {dimension_semantics = [#tpu.dimension_semantics<parallel>], iteration_bounds = array<i64: 2>, scalar_prefetch = 0 : i64, scratch_operands = 0 : i64, tpu.core_type = #tpu.core_type<tc>, window_params = [{transform_indices = @transform_0, window_bounds = array<i64: 1, 4, 256>}, {pipeline_mode = #tpu.pipeline_mode<synchronous>, transform_indices = @transform_1, window_bounds = array<i64: 4, 2>}, {pipeline_mode = #tpu.pipeline_mode<synchronous>, transform_indices = @transform_2, window_bounds = array<i64: 4, 2>}, {transform_indices = @transform_3, window_bounds = array<i64: 1, 4, 256>}]} {
    %c0 = arith.constant 0 : index
    %c0_0 = arith.constant 0 : index
    %c0_1 = arith.constant 0 : index
    %0 = vector.load %arg1[%c0, %c0_0, %c0_1] : memref<1x4x256xf32, #tpu.memory_space<vmem>>, vector<1x4x256xf32>
    %cst = arith.constant dense<0.000000e+00> : vector<1x4xf32>
    %1 = vector.multi_reduction <add>, %0, %cst [2] : vector<1x4x256xf32> to vector<1x4xf32>
    %2 = vector.shape_cast %1 : vector<1x4xf32> to vector<1x4x1xf32>
    %3 = vector.shape_cast %2 : vector<1x4x1xf32> to vector<4x1xf32>
    %c0_2 = arith.constant 0 : index
    %c0_3 = arith.constant 0 : index
    %4 = vector.load %arg2[%c0_2, %c0_3] : memref<4x2xf32, #tpu.memory_space<vmem>>, vector<4x2xf32>
    %5 = vector.broadcast %3 : vector<4x1xf32> to vector<4x2xf32>
    %6 = arith.mulf %5, %4 : vector<4x2xf32>
    %cst_4 = arith.constant dense<0.000000e+00> : vector<2xf32>
    %7 = vector.multi_reduction <add>, %6, %cst_4 [0] : vector<4x2xf32> to vector<2xf32>
    %8 = vector.shape_cast %7 : vector<2xf32> to vector<1x2xf32>
    %c0_5 = arith.constant 0 : index
    %c0_6 = arith.constant 0 : index
    %9 = vector.load %arg3[%c0_5, %c0_6] : memref<4x2xf32, #tpu.memory_space<vmem>>, vector<4x2xf32>
    %10 = vector.broadcast %8 : vector<1x2xf32> to vector<4x2xf32>
    %11 = arith.mulf %10, %9 : vector<4x2xf32>
    %cst_7 = arith.constant dense<0.000000e+00> : vector<4xf32>
    %12 = vector.multi_reduction <add>, %11, %cst_7 [1] : vector<4x2xf32> to vector<4xf32>
    %13 = vector.shape_cast %12 : vector<4xf32> to vector<4x1xf32>
    %cst_8 = arith.constant 0.000000e+00 : f32
    %14 = vector.broadcast %cst_8 : f32 to vector<4x1xf32>
    %15 = arith.subf %14, %13 : vector<4x1xf32>
    %16 = math.exp %15 : vector<4x1xf32>
    %cst_9 = arith.constant 1.000000e+00 : f32
    %17 = vector.broadcast %cst_9 : f32 to vector<4x1xf32>
    %18 = arith.addf %17, %16 : vector<4x1xf32>
    %cst_10 = arith.constant 1.000000e+00 : f32
    %19 = vector.broadcast %cst_10 : f32 to vector<4x1xf32>
    %20 = arith.divf %19, %18 : vector<4x1xf32>
    %21 = vector.shape_cast %20 : vector<4x1xf32> to vector<1x4x1xf32>
    %22 = vector.broadcast %21 : vector<1x4x1xf32> to vector<1x4x256xf32>
    %23 = arith.mulf %0, %22 : vector<1x4x256xf32>
    %c0_11 = arith.constant 0 : index
    %c0_12 = arith.constant 0 : index
    %c0_13 = arith.constant 0 : index
    %24 = vector.load %arg4[%c0_11, %c0_12, %c0_13] : memref<1x4x256xf32, #tpu.memory_space<vmem>>, vector<1x4x256xf32>
    tpu.vector_store %arg4[%c0_11, %c0_12, %c0_13], %23 {strides = array<i32>} : memref<1x4x256xf32, #tpu.memory_space<vmem>>, vector<1x4x256xf32>,
    return
  }
  func.func @transform_0(%arg0: i32) -> (i32, i32, i32) {
    %c0_i32 = arith.constant 0 : i32
    %c0_i32_0 = arith.constant 0 : i32
    %c0_i32_1 = arith.constant 0 : i32
    return %arg0, %c0_i32, %c0_i32_0 : i32, i32, i32
  }
  func.func @transform_1(%arg0: i32) -> (i32, i32) {
    %c0_i32 = arith.constant 0 : i32
    %c0_i32_0 = arith.constant 0 : i32
    %c0_i32_1 = arith.constant 0 : i32
    return %c0_i32, %c0_i32_0 : i32, i32
  }
  func.func @transform_2(%arg0: i32) -> (i32, i32) {
    %c0_i32 = arith.constant 0 : i32
    %c0_i32_0 = arith.constant 0 : i32
    %c0_i32_1 = arith.constant 0 : i32
    return %c0_i32, %c0_i32_0 : i32, i32
  }
  func.func @transform_3(%arg0: i32) -> (i32, i32, i32) {
    %c0_i32 = arith.constant 0 : i32
    %c0_i32_0 = arith.constant 0 : i32
    %c0_i32_1 = arith.constant 0 : i32
    return %arg0, %c0_i32, %c0_i32_0 : i32, i32, i32
  }
}

</mosaic_0001>

<bundles_post_ra>
// kernel: tpu_custom_call.1
= control target key start
LH: loop header
LB: loop body
LE: loop exit
PB: predicated region body
PF: predicated region fallthrough
CT: control target
= control target key end

     0   :  { %8 = vsyncpa [#allocation3], 0  ;;  %s650_s0 = inlined_call_operand.hbm [shape: f32[2,4,256], index: 0, kind: input, shape index: {}]   ;;  %s651_s1 = inlined_call_operand.vmem [shape: f32[4,2], index: 1, kind: input, shape index: {}]   ;;  %s652_s2 = inlined_call_operand.vmem [shape: f32[4,2], index: 2, kind: input, shape index: {}]   ;;  %s653_s3 = inlined_call_operand.hbm [shape: f32[2,4,256], index: 3, kind: output, shape index: {}]  }
   0x1   :  { %10 = vsyncpa [#allocation3 + $0x1], 0 }
   0x2   :  { %11 = vsyncpa [#allocation4], 0 }
   0x3   :  { %13 = vsyncpa [#allocation4 + $0x1], 0  ;;  %s499_s12 = smov 0   ;;  %s501_s13 = smov 0  }
   0x4   :  { %s503_s14 = smov 0   ;;  %s505_s15 = smov 0  }
   0x5 LB: > { %s520_s16 = sadd.s32 4294967295, %s474_s15   ;;  %s314_s17 = sadd.s32 4294967294, %s474_s15   ;;  %s474_s15 = sphi %s505_s15, %s670_s15   ;;  %s470_s14 = sphi %s503_s14, %s669_s14   ;;  %s466_s13 = sphi %s501_s13, %s668_s13   ;;  %s462_s12 = sphi %s499_s12, %s667_s12  }
   0x6   : > { %s524_s18 = sadd.s32 1, %s474_s15   ;;  %s26_s19 = sadd.s32 1, %s470_s14 }
   0x7   : > { %s23_s20 = ssub.s32 %s474_s15, %s524_s18  ;;  %p33_p0 = scmp.ne.s32.totalorder %s470_s14, %s466_s13 }
   0x8   : > { %p24_p1 = scmp.eq.s32.totalorder %s23_s20, 0  ;;  %p34_p2 = scmp.eq.s32.totalorder %s474_s15, 0 }
   0x9   : > { %p39_p3 = scmp.ne.s32.totalorder %s466_s13, %s462_s12  ;;  %p40_p4 = scmp.eq.s32.totalorder %s520_s16, 0 }
   0xa   : > { %s536_s21 = scalar_select %p24_p1, %s470_s14, %s26_s19  }
   0xb   : > { %p538_p5 = por %p34_p2, %p33_p0  ;;  %p542_p6 = por %p40_p4, %p39_p3 }
   0xc   : > { %p105_p7 = scmp.eq.s32.totalorder %s520_s16, 1  ;;  %p111_p8 = scmp.eq.s32.totalorder %s314_s17, 1 }
   0xd   : > { %s657_s23 = scalar_select %p542_p6, 1, 0 }
   0xe   : > { %p342_p10 = scmp.lt.s32.totalorder %s474_s15, 2  ;;  %p549_p11 = por %p105_p7, %p33_p0 }
   0xf   : > { %p553_p12 = por %p111_p8, %p39_p3  ;;  %s137_s26 = sand.u32 1, %s470_s14  }
  0x10   : > { %s658_s24 = scalar_select %p549_p11, 1, 0 }
  0x11   : > { %s659_s25 = scalar_select %p553_p12, 1, 0 }
  0x12   : > { %s328_s27 = sshll.u32 %s474_s15, 7  ;;  %s317_s28 = sshll.u32 %s137_s26, 3 }
  0x13   : > { %s562_s4 = scalar_lea.hbm %s650_s0, %s328_s27  ;;  %s141_s5 = scalar_lea.vmem [#allocation2], %s317_s28 }
  0x14   : > { %s149_s6 = sshll.u32 %s141_s5, 4  ;;  %p566_p13 = pnand %p342_p10, %p538_p5  ;;  %s570_s6 = int_to_ptr.vmem [resolvable:$true] %s149_s6 }
  0x15   : > { %s138_s8 = scalar_lea.sflag [#allocation3], %s137_s26  ;;  %s382_s9 = scalar_lea.hbm %s562_s4, 128 }
  0x16   : > { %p383_p2 = scmp.ne.s32.totalorder %s562_s4, %s382_s9  ;;  %p384_p3 = pneg %p566_p13 }
  0x17   : > { %s387_s17 = scalar_lea.hbm %s650_s0, 256  ;;  %p388_p5 = scmp.lt.s32.totalorder %s562_s4, %s650_s0 }
  0x18   : > { %p385_p4 = pnand %p384_p3, %p383_p2  ;;  %p389_p8 = scmp.lt.s32.totalorder %s387_s17, %s382_s9 }
  0x1a   : > { %p386_p7 = pneg %p385_p4  ;;  %p390_p10 = por %p389_p8, %p388_p5 }
  0x1c   : > { %p391_p9 = pnand %p390_p10, %p386_p7 }
  0x1e   : > { %394 = shalt.err (!%p391_p9)
}
  0x1f   : > { %s395_s22 = scalar_lea.vmem %s570_s6, 128  ;;  %s476_s26 = smov [#allocation2]  }
  0x20   : > { %p396_p0 = scmp.ne.s32.totalorder %s570_s6, %s395_s22  ;;  %s400_s27 = sshll.u32 %s476_s26, 4  ;;  %s401_s27 = int_to_ptr.vmem [resolvable:$false] %s400_s27 }
  0x21   : > { %s402_s28 = scalar_lea.vmem %s401_s27, 256  ;;  %p403_p4 = scmp.lt.s32.totalorder %s570_s6, %s401_s27 }
  0x22   : > { %p398_p1 = pnand %p396_p0, %p384_p3  ;;  %p404_p12 = scmp.lt.s32.totalorder %s402_s28, %s395_s22 }
  0x24   : > { %p399_p2 = pneg %p398_p1  ;;  %p405_p11 = por %p404_p12, %p403_p4 }
  0x26   : > { %p406_p6 = pnand %p405_p11, %p399_p2 }
  0x28   : > { %409 = shalt.err (!%p406_p6)
}
  0x29   : > { %337 = dma.hbm_to_vmem [thread:$0]  (!%p566_p13), %s562_s4, 128, %s570_s6, %s138_s8  }
  0x2a   : > { %p661_p9 = scmp.lt.s32.totalorder %s474_s15, 3  ;;  %p662_p7 = scmp.ge.s32.totalorder %s474_s15, 1 }
  0x2c   : > { %p155_p0 = pnand %p662_p7, %p661_p9 }
  0x2d   : > { %s597_s29 = sand.u32 (!%p155_p0), 1, %s466_s13   ;;  %p663_p6 = scmp.ne.s32.totalorder (!%p155_p0), %s657_s23, 0 }
  0x2e   : > { %158 = sbr.rel (%p155_p0) target bundleno = 403 (0x193), region = 32  ;;  %s321_s30 = sshll.u32 (!%p155_p0), %s597_s29, 3 }
  0x2f   : > { %s161_s5 = scalar_lea.sflag (!%p155_p0), [#allocation3], %s597_s29  ;;  %s164_s7 = scalar_lea.vmem (!%p155_p0), [#allocation2], %s321_s30 }
  0x33   : > { %453 = dma.done.wait (%p663_p6), %s161_s5, 128  }
  0x34   : > { %455 = vsyncadd (%p663_p6), %s161_s5, 4294967168  ;;  %vm191_vm0 = vcmask 1043456   ;;  %v187_v0 = vld [vmem:[%s164_s7] sm:$0xff]  ;;  %vm199_vm1 = vcmask 11264   ;;  %v477_v23 = vmov 839922192   ;;  %v222_v25 = vlaneseq }
  0x35   : > { %v189_v1 = vcombine.high %v187_v0, %v187_v0  ;;  %v192_v2 = vsel %vm191_vm0, %v187_v0, 0.0  ;;  %v197_v5 = vld [vmem:[%s651_s1] sm:$0xf]  ;;  %v220_v24 = vunpack.c.l.s4 %v477_v23  ;;  %s329_s9 = sshll.u32 %s520_s16, 7  ;;  %s186_s10 = scalar_lea.vmem [#allocation5], %s321_s30 }
  0x36   : > { %v207_v14 = vld [vmem:[%s652_s2] sm:$0xf]  ;;  %v223_v27 = vshrl.u32 %v222_v25, 7  ;;  %s244_s11 = sshll.u32 %s186_s10, 4  ;;  %s242_s20 = scalar_lea.hbm %s653_s3, %s329_s9  ;;  %s245_s11 = int_to_ptr.vmem [resolvable:$true] %s244_s11 }
  0x37   : > { %v193_v3 = vsel %vm191_vm0, %v189_v1, 0.0  ;;  %v221_v26 = vunpack.c.0.s8 %v220_v24  ;;  %s230_s22 = scalar_lea.sflag [#allocation4], %s597_s29  ;;  %s410_s26 = scalar_lea.vmem %s245_s11, 128 }
  0x38   : > { %v194_v4 = vadd.f32 %v193_v3, %v192_v2  ;;  %p411_p11 = scmp.ne.s32.totalorder %s245_s11, %s410_s26  ;;  %p664_p12 = scmp.ne.s32.totalorder %s658_s24, 0 }
  0x39   : > { %v224_v28 = vsub.s32 %v221_v26, %v223_v27  ;;  %s478_s27 = smov [#allocation5]  }
  0x3a   : > { %195 = vadd.xlane.f32.xlu0 %v194_v4  ;;  %p412_p13 = pnand %p411_p11, %p664_p12  ;;  %s414_s28 = sshll.u32 %s478_s27, 4  ;;  %s415_s28 = int_to_ptr.vmem [resolvable:$false] %s414_s28 }
  0x3b   : > { %s416_s16 = scalar_lea.vmem %s415_s28, 256  ;;  %p417_p3 = scmp.lt.s32.totalorder %s245_s11, %s415_s28 }
  0x3c   : > { %p413_p1 = pneg %p412_p13  ;;  %p418_p5 = scmp.lt.s32.totalorder %s416_s16, %s410_s26 }
  0x3e   : > { %p419_p8 = por %p418_p5, %p417_p3 }
  0x40   : > { %p420_p10 = pnand %p419_p8, %p413_p1 }
  0xc3   : > { %v196_v6 = vpop.xlane.xlu0 %195 }
  0xc4   : > { %v198_v7 = vmul.f32 %v197_v5, %v196_v6 }
  0xc6   : > { %v200_v8 = vsel %vm199_vm1, %v198_v7, 0.0 }
  0xc7   : > { %v201_v9 = vrot.slane %v200_v8, 4 }
  0xc9   : > { %v202_v10 = vadd.f32 %v201_v9, %v200_v8 }
  0xcb   : > { %v203_v11 = vrot.slane %v202_v10, 2 }
  0xcd   : > { %v204_v12 = vadd.f32 %v203_v11, %v202_v10 }
  0xcf   : > { %v205_v13 = vrot.slane %v204_v12, 1 }
  0xd1   : > { %v206_v15 = vadd.f32 %v205_v13, %v204_v12 }
  0xd3   : > { %v208_v16 = vmul.f32 %v207_v14, %v206_v15 }
  0xd5   : > { %v209_v17 = vsel %vm199_vm1, %v208_v16, 0.0 }
  0xd6   : > { %210 = vadd.xlane.f32.xlu0 %v209_v17 }
 0x15f   : > { %v211_v18 = vpop.xlane.xlu0 %210 }
 0x160   : > { %v212_v19 = vsub.f32 0.0, %v211_v18 }
 0x162   : > { %v213_v20 = vmul.f32 1.442695, %v212_v19 }
 0x164   : > { %378 = vpow2.f32 %v213_v20 }
 0x171   : > { %v379_v21 = vpop.eup %378 }
 0x172   : > { %v215_v22 = vadd.f32 1.0, %v379_v21 }
 0x174   : > { %380 = vrcp.f32 %v215_v22 }
 0x181   : > { %v381_v29 = vpop.eup %380 }
 0x182   : > { %v225_v30 = vrot.slane %v381_v29, %v224_v28 }
 0x184   : > { %v227_v31 = vmul.f32 %v225_v30, %v187_v0 }
 0x186   : > { %228 = vst [vmem:[%s186_s10] sm:$0xff] %v227_v31 }
 0x187   : > { %423 = shalt.err (!%p420_p10)
}
 0x188   : > { %s424_s30 = scalar_lea.hbm %s242_s20, 128  ;;  %s428_s7 = scalar_lea.hbm %s653_s3, 256 }
 0x189   : > { %p425_p2 = scmp.ne.s32.totalorder %s242_s20, %s424_s30  ;;  %p429_p7 = scmp.lt.s32.totalorder %s242_s20, %s653_s3 }
 0x18a   : > { %p430_p0 = scmp.lt.s32.totalorder %s428_s7, %s424_s30 }
 0x18b   : > { %p426_p4 = pnand %p425_p2, %p664_p12 }
 0x18c   : > { %p431_p6 = por %p430_p0, %p429_p7 }
 0x18d   : > { %p427_p9 = pneg %p426_p4 }
 0x18f   : > { %p432_p11 = pnand %p431_p6, %p427_p9 }
 0x191   : > { %435 = shalt.err (!%p432_p11)
}
 0x192   : > { %332 = dma.vmem_to_hbm [thread:$0]  (%p664_p12), %s245_s11, 128, %s242_s20, %s230_s22  }
 0x193 PF: > { %s256_s23 = sand.u32 1, %s462_s12   ;;  %p665_p13 = scmp.ne.s32.totalorder %s659_s25, 0 }
 0x194   : > { %p666_p1 = scmp.ge.s32.totalorder %s474_s15, 2  ;;  %s257_s8 = scalar_lea.sflag [#allocation4], %s256_s23 }
 0x196   : > { %p339_p3 = pnand %p666_p1, %p665_p13 }
 0x198   : > { %p340_p5 = pneg %p339_p3 }
 0x19a   : > { %457 = dma.done.wait (%p340_p5), %s257_s8, 128  }
 0x19b   : > { %459 = vsyncadd (%p340_p5), %s257_s8, 4294967168  ;;  %p16_p8 = scmp.ge.s32.totalorder %s524_s18, 4   ;;  %s667_s12 = smov %s466_s13 }
 0x19c   : > { %s668_s13 = smov %s470_s14  ;;  %s669_s14 = smov %s536_s21 }
 0x19d   : > { %s670_s15 = smov %s524_s18  ;;  %18 = sbr.rel (!%p16_p8) target bundleno = 5 (0x5), region = 77 }
 0x1a2   :  { %262 = vsyncpa [#allocation3], 1 }
 0x1a3   :  { %264 = vsyncpa [#allocation3 + $0x1], 1 }
 0x1a4   :  { %265 = vsyncpa [#allocation4], 1 }
 0x1a5   :  { %267 = vsyncpa [#allocation4 + $0x1], 1 }

</bundles_post_ra>
